<compile_context>
chip_gen: v6e
topology: v6e:2x2x1
jax: 0.10.0
libtpu: 0.0.40
codegen_flags: <defaults>
</compile_context>

<pallas_src>
import jax
import jax.numpy as jnp
from jax.experimental import pallas as pl
from jax.experimental.pallas import tpu as pltpu


_TILE_B_MAX = 16384           # lane-dense batch tile (f32 temps ~15 MiB at this size)
_VMEM_LIMIT = 48 * 1024 * 1024  # explicit scoped-VMEM limit; < v7x 64 MiB physical


def _round_up(x, m):
    return (x + m - 1) // m * m


def _mlp_kernel(x_ref,
                w1_ref, b1_ref,
                w2_ref, b2_ref,
                w3_ref, b3_ref,
                w4_ref, b4_ref,
                o_ref):
    # Activations are (features, batch_tile): batch on the lane axis so every
    # intermediate and the output block is lane-dense.
    x = x_ref[...]                       # (4, TB)  f32
    w1 = w1_ref[...]                     # (64, 4)  f32

    # Layer 1: K=4 contraction -> VPU broadcast-FMAs in f32 (keep it off the
    # MXU; VPU has slack even after the bf16 MXU speedup).
    # NOTE: if the bundle dump ever shows these broadcasts materializing
    # (64, TB) temps, switch the x-row reads to stride-0 sublane slices
    # (x_ref[pl.ds(k, 64, stride=0), :]).
    h = b1_ref[...] + w1[:, 0:1] * x[0:1, :]
    h = h + w1[:, 1:2] * x[1:2, :]
    h = h + w1[:, 2:3] * x[2:3, :]
    h = h + w1[:, 3:4] * x[3:4, :]
    h = jnp.maximum(h, 0.0)              # (64, TB) f32

    # Layers 2-4 on the MXU: explicit bf16 operands, f32 accumulation,
    # bias + ReLU in f32 (v5e VPU has no bf16 VALU path).
    h = jnp.dot(w2_ref[...], h.astype(jnp.bfloat16),
                preferred_element_type=jnp.float32) + b2_ref[...]
    h = jnp.maximum(h, 0.0)              # (64, TB) f32

    h = jnp.dot(w3_ref[...], h.astype(jnp.bfloat16),
                preferred_element_type=jnp.float32) + b3_ref[...]
    h = jnp.maximum(h, 0.0)              # (16, TB) f32

    h = jnp.dot(w4_ref[...], h.astype(jnp.bfloat16),
                preferred_element_type=jnp.float32) + b4_ref[...]
    o_ref[...] = h.astype(o_ref.dtype)   # (2, TB)  lane-dense store


@jax.jit
def mlp_forward(image, params):
    """image: (B, ...) with prod(...) == 4.  Returns (B, 2) float32."""
    b = image.shape[0]
    x = image.reshape(b, -1).astype(jnp.float32)      # mirrors image.view(B, -1)
    assert x.shape[1] == 4

    (w1, b1), (w2, b2), (w3, b3), (w4, b4) = params
    # Cast the MXU weights to bf16 once (tiny arrays, negligible XLA op).
    w2b = w2.astype(jnp.bfloat16)
    w3b = w3.astype(jnp.bfloat16)
    w4b = w4.astype(jnp.bfloat16)

    # Lane-dense layout: batch on the last (lane) axis. (Wrapper transposes are
    # second-order cost; drop them if the call site accepts (features, batch).)
    xt = x.T                                          # (4, B)

    # Tile so that medium batches still produce >= 2 grid steps (both v7x TCs
    # get work), capped by _TILE_B_MAX for VMEM; last block may be ragged.
    tile_b = min(_TILE_B_MAX, _round_up(pl.cdiv(b, 2), 128))
    grid = (pl.cdiv(b, tile_b),)

    def resident(shape):
        # Full block, constant index -> stays VMEM-resident across grid steps.
        return pl.BlockSpec(shape, lambda i: (0, 0))

    in_specs = [
        pl.BlockSpec((4, tile_b), lambda i: (0, i)),  # streamed activations
        resident(w1.shape), resident(b1.shape),
        resident(w2b.shape), resident(b2.shape),
        resident(w3b.shape), resident(b3.shape),
        resident(w4b.shape), resident(b4.shape),
    ]
    out_specs = pl.BlockSpec((2, tile_b), lambda i: (0, i))

    flops = 2 * b * (4 * 64 + 64 * 64 + 64 * 16 + 16 * 2)
    param_bytes = (w1.size * 4 + b1.size * 4
                   + w2b.size * 2 + b2.size * 4
                   + w3b.size * 2 + b3.size * 4
                   + w4b.size * 2 + b4.size * 4)
    bytes_accessed = 4 * xt.size + 4 * 2 * b + param_bytes

    out_t = pl.pallas_call(
        _mlp_kernel,
        out_shape=jax.ShapeDtypeStruct((2, b), jnp.float32),
        grid=grid,
        in_specs=in_specs,
        out_specs=out_specs,
        compiler_params=pltpu.CompilerParams(
            dimension_semantics=("parallel",),
            vmem_limit_bytes=_VMEM_LIMIT),
        cost_estimate=pl.CostEstimate(flops=flops, transcendentals=0,
                                      bytes_accessed=bytes_accessed),
    )(xt, w1, b1, w2b, b2, w3b, b3, w4b, b4)

    return out_t.T                                    # (B, 2)


def init_params(key):
    """PyTorch nn.Linear layout: weight (out_features, in_features), bias kept
    as (out_features, 1) so it broadcasts over the lane (batch) axis.
    Init follows PyTorch's default U(-1/sqrt(fan_in), 1/sqrt(fan_in))."""
    dims = [(4, 64), (64, 64), (64, 16), (16, 2)]
    params = []
    for fan_in, fan_out in dims:
        key, kw, kb = jax.random.split(key, 3)
        bound = 1.0 / (fan_in ** 0.5)
        w = jax.random.uniform(kw, (fan_out, fan_in), jnp.float32,
                               minval=-bound, maxval=bound)
        bias = jax.random.uniform(kb, (fan_out, 1), jnp.float32,
                                  minval=-bound, maxval=bound)
        params.append((w, bias))
    return params


def _ref_f32(image, params):
    """Pure-JAX f32 reference (PyTorch-module semantics)."""
    x = image.reshape(image.shape[0], -1).astype(jnp.float32)
    h = x
    for i, (w, bias) in enumerate(params):
        h = h @ w.T + bias.T
        if i < 3:
            h = jnp.maximum(h, 0.0)
    return h


def _ref_bf16_matched(image, params):
    """Reference matching the kernel's numerics (bf16 MXU operands, f32 acc)."""
    x = image.reshape(image.shape[0], -1).astype(jnp.float32)
    (w1, b1), (w2, b2), (w3, b3), (w4, b4) = params
    h = jnp.maximum(x @ w1.T + b1.T, 0.0)
    h = jnp.maximum(jnp.dot(h.astype(jnp.bfloat16), w2.T.astype(jnp.bfloat16),
                            preferred_element_type=jnp.float32) + b2.T, 0.0)
    h = jnp.maximum(jnp.dot(h.astype(jnp.bfloat16), w3.T.astype(jnp.bfloat16),
                            preferred_element_type=jnp.float32) + b3.T, 0.0)
    h = jnp.dot(h.astype(jnp.bfloat16), w4.T.astype(jnp.bfloat16),
                preferred_element_type=jnp.float32) + b4.T
    return h


if __name__ == "__main__":
    key = jax.random.PRNGKey(0)
    key, k_img, k_img2 = jax.random.split(key, 3)

    params = init_params(key)

    # "image" input whose flattened feature size is 4 (input_size = 4)
    batch = 8
    image = jax.random.normal(k_img, (batch, 2, 2), dtype=jnp.float32)

    out = mlp_forward(image, params)
    jax.block_until_ready(out)

    assert out.shape == (batch, 2)
    assert jnp.allclose(out, _ref_bf16_matched(image, params), atol=1e-3, rtol=1e-3)
    assert jnp.allclose(out, _ref_f32(image, params), atol=5e-2, rtol=5e-2)

    # second sanity run: ragged last block + multi-step (both-TC) grid path
    batch2 = 333
    image2 = jax.random.normal(k_img2, (batch2, 4), dtype=jnp.float32)
    out2 = mlp_forward(image2, params)
    jax.block_until_ready(out2)
    assert out2.shape == (batch2, 2)
    assert jnp.allclose(out2, _ref_bf16_matched(image2, params), atol=1e-3, rtol=1e-3)

    print("KERNEL_OK")
</pallas_src>

<mosaic_0001>
module attributes {stable_mosaic.version = 11 : i64} {
  func.func @_mlp_kernel(%arg0: i32, %arg1: memref<4x128xf32, #tpu.memory_space<vmem>>, %arg2: memref<64x4xf32, #tpu.memory_space<vmem>>, %arg3: memref<64x1xf32, #tpu.memory_space<vmem>>, %arg4: memref<64x64xbf16, #tpu.memory_space<vmem>>, %arg5: memref<64x1xf32, #tpu.memory_space<vmem>>, %arg6: memref<16x64xbf16, #tpu.memory_space<vmem>>, %arg7: memref<16x1xf32, #tpu.memory_space<vmem>>, %arg8: memref<2x16xbf16, #tpu.memory_space<vmem>>, %arg9: memref<2x1xf32, #tpu.memory_space<vmem>>, %arg10: memref<2x128xf32, #tpu.memory_space<vmem>>) attributes {dimension_semantics = [#tpu.dimension_semantics<parallel>], iteration_bounds = array<i64: 1>, scalar_prefetch = 0 : i64, scratch_operands = 0 : i64, tpu.core_type = #tpu.core_type<tc>, window_params = [{transform_indices = @transform_0, window_bounds = array<i64: 4, 128>}, {pipeline_mode = #tpu.pipeline_mode<synchronous>, transform_indices = @transform_1, window_bounds = array<i64: 64, 4>}, {pipeline_mode = #tpu.pipeline_mode<synchronous>, transform_indices = @transform_2, window_bounds = array<i64: 64, 1>}, {pipeline_mode = #tpu.pipeline_mode<synchronous>, transform_indices = @transform_3, window_bounds = array<i64: 64, 64>}, {pipeline_mode = #tpu.pipeline_mode<synchronous>, transform_indices = @transform_4, window_bounds = array<i64: 64, 1>}, {pipeline_mode = #tpu.pipeline_mode<synchronous>, transform_indices = @transform_5, window_bounds = array<i64: 16, 64>}, {pipeline_mode = #tpu.pipeline_mode<synchronous>, transform_indices = @transform_6, window_bounds = array<i64: 16, 1>}, {pipeline_mode = #tpu.pipeline_mode<synchronous>, transform_indices = @transform_7, window_bounds = array<i64: 2, 16>}, {pipeline_mode = #tpu.pipeline_mode<synchronous>, transform_indices = @transform_8, window_bounds = array<i64: 2, 1>}, {transform_indices = @transform_9, window_bounds = array<i64: 2, 128>}]} {
    %c0 = arith.constant 0 : index
    %c0_0 = arith.constant 0 : index
    %0 = vector.load %arg1[%c0, %c0_0] : memref<4x128xf32, #tpu.memory_space<vmem>>, vector<4x128xf32>
    %c0_1 = arith.constant 0 : index
    %c0_2 = arith.constant 0 : index
    %1 = vector.load %arg2[%c0_1, %c0_2] : memref<64x4xf32, #tpu.memory_space<vmem>>, vector<64x4xf32>
    %c0_3 = arith.constant 0 : index
    %c0_4 = arith.constant 0 : index
    %2 = vector.load %arg3[%c0_3, %c0_4] : memref<64x1xf32, #tpu.memory_space<vmem>>, vector<64x1xf32>
    %3 = vector.extract_strided_slice %1 {offsets = [0, 0], sizes = [64, 1], strides = [1, 1]} : vector<64x4xf32> to vector<64x1xf32>
    %4 = vector.extract_strided_slice %0 {offsets = [0, 0], sizes = [1, 128], strides = [1, 1]} : vector<4x128xf32> to vector<1x128xf32>
    %5 = vector.broadcast %3 : vector<64x1xf32> to vector<64x128xf32>
    %6 = vector.broadcast %4 : vector<1x128xf32> to vector<64x128xf32>
    %7 = arith.mulf %5, %6 : vector<64x128xf32>
    %8 = vector.broadcast %2 : vector<64x1xf32> to vector<64x128xf32>
    %9 = arith.addf %8, %7 : vector<64x128xf32>
    %10 = vector.extract_strided_slice %1 {offsets = [0, 1], sizes = [64, 1], strides = [1, 1]} : vector<64x4xf32> to vector<64x1xf32>
    %11 = vector.extract_strided_slice %0 {offsets = [1, 0], sizes = [1, 128], strides = [1, 1]} : vector<4x128xf32> to vector<1x128xf32>
    %12 = vector.broadcast %10 : vector<64x1xf32> to vector<64x128xf32>
    %13 = vector.broadcast %11 : vector<1x128xf32> to vector<64x128xf32>
    %14 = arith.mulf %12, %13 : vector<64x128xf32>
    %15 = arith.addf %9, %14 : vector<64x128xf32>
    %16 = vector.extract_strided_slice %1 {offsets = [0, 2], sizes = [64, 1], strides = [1, 1]} : vector<64x4xf32> to vector<64x1xf32>
    %17 = vector.extract_strided_slice %0 {offsets = [2, 0], sizes = [1, 128], strides = [1, 1]} : vector<4x128xf32> to vector<1x128xf32>
    %18 = vector.broadcast %16 : vector<64x1xf32> to vector<64x128xf32>
    %19 = vector.broadcast %17 : vector<1x128xf32> to vector<64x128xf32>
    %20 = arith.mulf %18, %19 : vector<64x128xf32>
    %21 = arith.addf %15, %20 : vector<64x128xf32>
    %22 = vector.extract_strided_slice %1 {offsets = [0, 3], sizes = [64, 1], strides = [1, 1]} : vector<64x4xf32> to vector<64x1xf32>
    %23 = vector.extract_strided_slice %0 {offsets = [3, 0], sizes = [1, 128], strides = [1, 1]} : vector<4x128xf32> to vector<1x128xf32>
    %24 = vector.broadcast %22 : vector<64x1xf32> to vector<64x128xf32>
    %25 = vector.broadcast %23 : vector<1x128xf32> to vector<64x128xf32>
    %26 = arith.mulf %24, %25 : vector<64x128xf32>
    %27 = arith.addf %21, %26 : vector<64x128xf32>
    %cst = arith.constant 0.000000e+00 : f32
    %28 = vector.broadcast %cst : f32 to vector<64x128xf32>
    %29 = arith.maximumf %27, %28 : vector<64x128xf32>
    %c0_5 = arith.constant 0 : index
    %c0_6 = arith.constant 0 : index
    %30 = vector.load %arg4[%c0_5, %c0_6] : memref<64x64xbf16, #tpu.memory_space<vmem>>, vector<64x64xbf16>
    %31 = arith.truncf %29 : vector<64x128xf32> to vector<64x128xbf16>
    %cst_7 = arith.constant dense<0.000000e+00> : vector<64x128xf32>
    %32 = tpu.matmul %30, %31, %cst_7 {dimension_numbers = #tpu.dot_dimension_numbers<[1], [0], [0], [1], [0, 0, 1, 1], [], []>} : vector<64x64xbf16>, vector<64x128xbf16>, vector<64x128xf32> -> vector<64x128xf32>
    %c0_8 = arith.constant 0 : index
    %c0_9 = arith.constant 0 : index
    %33 = vector.load %arg5[%c0_8, %c0_9] : memref<64x1xf32, #tpu.memory_space<vmem>>, vector<64x1xf32>
    %34 = vector.broadcast %33 : vector<64x1xf32> to vector<64x128xf32>
    %35 = arith.addf %32, %34 : vector<64x128xf32>
    %cst_10 = arith.constant 0.000000e+00 : f32
    %36 = vector.broadcast %cst_10 : f32 to vector<64x128xf32>
    %37 = arith.maximumf %35, %36 : vector<64x128xf32>
    %c0_11 = arith.constant 0 : index
    %c0_12 = arith.constant 0 : index
    %38 = vector.load %arg6[%c0_11, %c0_12] : memref<16x64xbf16, #tpu.memory_space<vmem>>, vector<16x64xbf16>
    %39 = arith.truncf %37 : vector<64x128xf32> to vector<64x128xbf16>
    %cst_13 = arith.constant dense<0.000000e+00> : vector<16x128xf32>
    %40 = tpu.matmul %38, %39, %cst_13 {dimension_numbers = #tpu.dot_dimension_numbers<[1], [0], [0], [1], [0, 0, 1, 1], [], []>} : vector<16x64xbf16>, vector<64x128xbf16>, vector<16x128xf32> -> vector<16x128xf32>
    %c0_14 = arith.constant 0 : index
    %c0_15 = arith.constant 0 : index
    %41 = vector.load %arg7[%c0_14, %c0_15] : memref<16x1xf32, #tpu.memory_space<vmem>>, vector<16x1xf32>
    %42 = vector.broadcast %41 : vector<16x1xf32> to vector<16x128xf32>
    %43 = arith.addf %40, %42 : vector<16x128xf32>
    %cst_16 = arith.constant 0.000000e+00 : f32
    %44 = vector.broadcast %cst_16 : f32 to vector<16x128xf32>
    %45 = arith.maximumf %43, %44 : vector<16x128xf32>
    %c0_17 = arith.constant 0 : index
    %c0_18 = arith.constant 0 : index
    %46 = vector.load %arg8[%c0_17, %c0_18] : memref<2x16xbf16, #tpu.memory_space<vmem>>, vector<2x16xbf16>
    %47 = arith.truncf %45 : vector<16x128xf32> to vector<16x128xbf16>
    %cst_19 = arith.constant dense<0.000000e+00> : vector<2x128xf32>
    %48 = tpu.matmul %46, %47, %cst_19 {dimension_numbers = #tpu.dot_dimension_numbers<[1], [0], [0], [1], [0, 0, 1, 1], [], []>} : vector<2x16xbf16>, vector<16x128xbf16>, vector<2x128xf32> -> vector<2x128xf32>
    %c0_20 = arith.constant 0 : index
    %c0_21 = arith.constant 0 : index
    %49 = vector.load %arg9[%c0_20, %c0_21] : memref<2x1xf32, #tpu.memory_space<vmem>>, vector<2x1xf32>
    %50 = vector.broadcast %49 : vector<2x1xf32> to vector<2x128xf32>
    %51 = arith.addf %48, %50 : vector<2x128xf32>
    %c0_22 = arith.constant 0 : index
    %c0_23 = arith.constant 0 : index
    %52 = vector.load %arg10[%c0_22, %c0_23] : memref<2x128xf32, #tpu.memory_space<vmem>>, vector<2x128xf32>
    tpu.vector_store %arg10[%c0_22, %c0_23], %51 {strides = array<i32>} : memref<2x128xf32, #tpu.memory_space<vmem>>, vector<2x128xf32>,
    return
  }
  func.func @transform_0(%arg0: i32) -> (i32, i32) {
    %c0_i32 = arith.constant 0 : i32
    %c0_i32_0 = arith.constant 0 : i32
    return %c0_i32, %arg0 : i32, i32
  }
  func.func @transform_1(%arg0: i32) -> (i32, i32) {
    %c0_i32 = arith.constant 0 : i32
    %c0_i32_0 = arith.constant 0 : i32
    %c0_i32_1 = arith.constant 0 : i32
    return %c0_i32, %c0_i32_0 : i32, i32
  }
  func.func @transform_2(%arg0: i32) -> (i32, i32) {
    %c0_i32 = arith.constant 0 : i32
    %c0_i32_0 = arith.constant 0 : i32
    %c0_i32_1 = arith.constant 0 : i32
    return %c0_i32, %c0_i32_0 : i32, i32
  }
  func.func @transform_3(%arg0: i32) -> (i32, i32) {
    %c0_i32 = arith.constant 0 : i32
    %c0_i32_0 = arith.constant 0 : i32
    %c0_i32_1 = arith.constant 0 : i32
    return %c0_i32, %c0_i32_0 : i32, i32
  }
  func.func @transform_4(%arg0: i32) -> (i32, i32) {
    %c0_i32 = arith.constant 0 : i32
    %c0_i32_0 = arith.constant 0 : i32
    %c0_i32_1 = arith.constant 0 : i32
    return %c0_i32, %c0_i32_0 : i32, i32
  }
  func.func @transform_5(%arg0: i32) -> (i32, i32) {
    %c0_i32 = arith.constant 0 : i32
    %c0_i32_0 = arith.constant 0 : i32
    %c0_i32_1 = arith.constant 0 : i32
    return %c0_i32, %c0_i32_0 : i32, i32
  }
  func.func @transform_6(%arg0: i32) -> (i32, i32) {
    %c0_i32 = arith.constant 0 : i32
    %c0_i32_0 = arith.constant 0 : i32
    %c0_i32_1 = arith.constant 0 : i32
    return %c0_i32, %c0_i32_0 : i32, i32
  }
  func.func @transform_7(%arg0: i32) -> (i32, i32) {
    %c0_i32 = arith.constant 0 : i32
    %c0_i32_0 = arith.constant 0 : i32
    %c0_i32_1 = arith.constant 0 : i32
    return %c0_i32, %c0_i32_0 : i32, i32
  }
  func.func @transform_8(%arg0: i32) -> (i32, i32) {
    %c0_i32 = arith.constant 0 : i32
    %c0_i32_0 = arith.constant 0 : i32
    %c0_i32_1 = arith.constant 0 : i32
    return %c0_i32, %c0_i32_0 : i32, i32
  }
  func.func @transform_9(%arg0: i32) -> (i32, i32) {
    %c0_i32 = arith.constant 0 : i32
    %c0_i32_0 = arith.constant 0 : i32
    return %c0_i32, %arg0 : i32, i32
  }
}

</mosaic_0001>

<bundles_post_ra>
// kernel: mlp_forward.1
= control target key start
LH: loop header
LB: loop body
LE: loop exit
PB: predicated region body
PF: predicated region fallthrough
CT: control target
= control target key end

     0   :  { %v736_v2 = vmov 2   ;;  %v737_v3 = vmov 0   ;;  %s978_s0 = inlined_call_operand.vmem [shape: f32[4,8], index: 0, kind: input, shape index: {}]   ;;  %s979_s1 = inlined_call_operand.vmem [shape: f32[64,4], index: 1, kind: input, shape index: {}]   ;;  %s980_s2 = inlined_call_operand.vmem [shape: f32[64,1], index: 2, kind: input, shape index: {}]   ;;  %s981_s3 = inlined_call_operand.vmem [shape: bf16[64,64], index: 3, kind: input, shape index: {}]   ;;  %s982_s4 = inlined_call_operand.vmem [shape: f32[64,1], index: 4, kind: input, shape index: {}]   ;;  %s983_s5 = inlined_call_operand.vmem [shape: bf16[16,64], index: 5, kind: input, shape index: {}]   ;;  %s984_s6 = inlined_call_operand.vmem [shape: f32[16,1], index: 6, kind: input, shape index: {}]   ;;  %s985_s7 = inlined_call_operand.vmem [shape: bf16[2,16], index: 7, kind: input, shape index: {}]   ;;  %s986_s8 = inlined_call_operand.vmem [shape: f32[2,1], index: 8, kind: input, shape index: {}]   ;;  %s987_s9 = inlined_call_operand.hbm [shape: f32[2,8], index: 9, kind: output, shape index: {}]  }
   0x1   :  { %v49_v0 = vld [vmem:[%s980_s2 + $0x30] sm:$0xff]  ;;  %v39_v1 = vld [vmem:[%s979_s1 + $0x20] sm:$0xff]  ;;  %692 = vset.pattern.permute.xlu0 %v736_v2  ;;  %684 = vset.pattern.permute.xlu1 %v737_v3  ;;  %v50_v4 = vld [vmem:[%s980_s2 + $0x38] sm:$0xff] }
   0x2   :  { %135 = vperm.xlu1 %684, %v49_v0   ;;  %220 = vperm.xlu0 %692, %v39_v1   ;;  %v41_v5 = vld [vmem:[%s979_s1 + $0x30] sm:$0xff]  ;;  %v42_v6 = vld [vmem:[%s979_s1 + $0x38] sm:$0xff] }
   0x6   :  { %140 = vperm.xlu1 %684, %v50_v4   ;;  %693 = vset.pattern.permute.xlu0 %v737_v3 }
   0x7   :  { %83 = vperm.xlu0 %693, %v41_v5  }
   0x8   :  { %14 = vsyncpa [#allocation3], 0  ;;  %v738_v7 = vmov 1   ;;  %v40_v8 = vld [vmem:[%s979_s1 + $0x28] sm:$0xff]  ;;  %v47_v9 = vld [vmem:[%s980_s2 + $0x20] sm:$0xff]  ;;  %v739_v14 = vmov 3   ;;  %v91_v38 = vlaneseq }
   0x9   :  { %v46_v10 = vld [vmem:[%s980_s2 + $0x18] sm:$0xff]  ;;  %v36_v11 = vld [vmem:[%s979_s1 + $0x8] sm:$0xff]  ;;  %v43_v13 = vld [vmem:[%s980_s2] sm:$0xff]  ;;  %vm395_vm0 = vcmask 523264   ;;  %vm741_vm1 = vmmov 0   ;;  %vm558_vm2 = vcmask 130048  }
   0xa   :  { %685 = vset.pattern.permute.xlu1 %v738_v7  ;;  %v48_v12 = vld [vmem:[%s980_s2 + $0x28] sm:$0xff]  ;;  %v35_v15 = vld [vmem:[%s979_s1] sm:$0xff]  ;;  %v37_v16 = vld [vmem:[%s979_s1 + $0x10] sm:$0xff]  ;;  %v92_v43 = vshrl.u32 %v91_v38, 7  ;;  %s742_s25 = smov [#allocation2]  }
   0xb   :  { %180 = vperm.xlu1 %685, %v42_v6   ;;  %88 = vperm.xlu0 %693, %v42_v6   ;;  %v38_v17 = vld [vmem:[%s979_s1 + $0x18] sm:$0xff]  ;;  %v45_v18 = vld [vmem:[%s980_s2 + $0x10] sm:$0xff]  ;;  %v44_v19 = vld [vmem:[%s980_s2 + $0x8] sm:$0xff]  ;;  %s609_s26 = sshll.u32 %s742_s25, 4  ;;  %s610_s26 = int_to_ptr.vmem [resolvable:$true] %s609_s26 }
   0xc   :  { %v709_v20 = vld [vmem:[%s981_s3] sm:$0xff]   ;;  %v334_v25 = vld [vmem:[%s982_s4 + $0x38] sm:$0xff]  ;;  %v333_v26 = vld [vmem:[%s982_s4 + $0x30] sm:$0xff]  ;;  %v93_v47 = vsub.s32 0, %v92_v43  ;;  %v185_v52 = vsub.s32 1, %v92_v43  ;;  %v237_v54 = vsub.s32 2, %v92_v43  ;;  %p719_p1 = scmp.lt.s32.totalorder %s610_s26, %s610_s26 }
   0xd   :  { %651 = vmatprep.mubr.msk.bf16.mxu0 %vm395_vm0, %v709_v20  ;;  %v331_v29 = vld [vmem:[%s982_s4 + $0x20] sm:$0xff]  ;;  %v332_v30 = vld [vmem:[%s982_s4 + $0x28] sm:$0xff]  ;;  %v329_v32 = vld [vmem:[%s982_s4 + $0x10] sm:$0xff]  ;;  %v289_v59 = vsub.s32 3, %v92_v43  ;;  %s714_s27 = scalar_lea.vmem %s610_s26, 32 }
   0xe   :  { %v330_v33 = vld [vmem:[%s982_s4 + $0x18] sm:$0xff]  ;;  %v327_v36 = vld [vmem:[%s982_s4] sm:$0xff]  ;;  %v328_v37 = vld [vmem:[%s982_s4 + $0x8] sm:$0xff]  ;;  %p715_p0 = scmp.ne.s32.totalorder %s610_s26, %s714_s27  ;;  %p720_p2 = scmp.lt.s32.totalorder %s714_s27, %s714_s27 }
   0xf   :  { %686 = vset.pattern.permute.xlu1 %v737_v3  ;;  %78 = vperm.xlu0 %693, %v40_v8   ;;  %v487_v41 = vld [vmem:[%s984_s6] sm:$0xff]  ;;  %v488_v42 = vld [vmem:[%s984_s6 + $0x8] sm:$0xff] }
  0x10   :  { %73 = vperm.xlu1 %686, %v39_v1   ;;  %v552_v46 = vld [vmem:[%s986_s8] sm:$0x3]  ;;  %p721_p3 = por %p720_p2, %p719_p1 }
  0x11   :  { %v34_v48 = vld [vmem:[%s978_s0] sm:$0xf] }
  0x12   :  { %v908_v51 = vrot.slane %v34_v48, %v93_v47  ;;  %v911_v56 = vrot.slane %v34_v48, %v185_v52  ;;  %v914_v60 = vrot.slane %v34_v48, %v237_v54  ;;  %p722_p4 = pnand %p721_p3, %p715_p0 }
  0x13   :  { %125 = vperm.xlu0 %693, %v47_v9  }
  0x14   :  { %687 = vset.pattern.permute.xlu1 %v736_v2 }
  0x15   :  { %228 = vperm.xlu1 %687, %v41_v5  }
  0x17   :  { %120 = vperm.xlu0 %693, %v46_v10  }
  0x19   :  { %232 = vperm.xlu1 %687, %v42_v6  }
  0x1b   :  { %58 = vperm.xlu0 %693, %v36_v11  }
  0x1d   :  { %688 = vset.pattern.permute.xlu1 %v737_v3 }
  0x1e   :  { %130 = vperm.xlu1 %688, %v48_v12  }
  0x1f   :  { %105 = vperm.xlu0 %693, %v43_v13  }
  0x22   :  { %689 = vset.pattern.permute.xlu1 %v738_v7 }
  0x23   :  { %172 = vperm.xlu1 %689, %v40_v8   ;;  %700 = vset.pattern.permute.xlu0 %v738_v7 }
  0x24   :  { %176 = vperm.xlu0 %700, %v41_v5  }
  0x27   :  { %690 = vset.pattern.permute.xlu1 %v739_v14 }
  0x28   :  { %280 = vperm.xlu1 %690, %v41_v5   ;;  %168 = vperm.xlu0 %700, %v39_v1  }
  0x2c   :  { %691 = vset.pattern.permute.xlu1 %v737_v3  ;;  %152 = vperm.xlu0 %700, %v35_v15  }
  0x2d   :  { %63 = vperm.xlu1 %691, %v37_v16  }
  0x30   :  { %702 = vset.pattern.permute.xlu0 %v739_v14 }
  0x31   :  { %68 = vperm.xlu1 %691, %v38_v17   ;;  %284 = vperm.xlu0 %702, %v42_v6  }
  0x35   :  { %694 = vset.pattern.permute.xlu1 %v736_v2  ;;  %272 = vperm.xlu0 %702, %v39_v1  }
  0x36   :  { %224 = vperm.xlu1 %694, %v40_v8  }
  0x39   :  { %268 = vperm.xlu0 %702, %v38_v17  }
  0x3a   :  { %695 = vset.pattern.permute.xlu1 %v737_v3 }
  0x3b   :  { %115 = vperm.xlu1 %695, %v45_v18  }
  0x3d   :  { %256 = vperm.xlu0 %702, %v35_v15  }
  0x3f   :  { %696 = vset.pattern.permute.xlu1 %v738_v7 }
  0x40   :  { %160 = vperm.xlu1 %696, %v37_v16  }
  0x41   :  { %707 = vset.pattern.permute.xlu0 %v737_v3 }
  0x42   :  { %367 = vperm.xlu0 %707, %v333_v26  }
  0x44   :  { %164 = vperm.xlu1 %696, %v38_v17  }
  0x46   :  { %362 = vperm.xlu0 %707, %v332_v30  }
  0x48   :  { %697 = vset.pattern.permute.xlu1 %v739_v14 }
  0x49   :  { %276 = vperm.xlu1 %697, %v40_v8  }
  0x4a   :  { %352 = vperm.xlu0 %707, %v330_v33  }
  0x4d   :  { %698 = vset.pattern.permute.xlu1 %v737_v3 }
  0x4e   :  { %53 = vperm.xlu1 %698, %v35_v15   ;;  %342 = vperm.xlu0 %707, %v328_v37  }
  0x52   :  { %699 = vset.pattern.permute.xlu1 %v736_v2  ;;  %496 = vperm.xlu0 %707, %v488_v42  }
  0x53   :  { %212 = vperm.xlu1 %699, %v37_v16  }
  0x57   :  { %216 = vperm.xlu1 %699, %v38_v17  }
  0x5b   :  { %701 = vset.pattern.permute.xlu1 %v737_v3 }
  0x5c   :  { %110 = vperm.xlu1 %701, %v44_v19  }
  0x60   :  { %703 = vset.pattern.permute.xlu1 %v738_v7 }
  0x61   :  { %156 = vperm.xlu1 %703, %v36_v11  }
  0x65   :  { %704 = vset.pattern.permute.xlu1 %v739_v14 }
  0x66   :  { %264 = vperm.xlu1 %704, %v37_v16  }
  0x6a   :  { %705 = vset.pattern.permute.xlu1 %v736_v2  ;;  %v917_v2 = vrot.slane %v34_v48, %v289_v59 }
  0x6b   :  { %204 = vperm.xlu1 %705, %v35_v15  }
  0x6f   :  { %208 = vperm.xlu1 %705, %v36_v11  }
  0x73   :  { %706 = vset.pattern.permute.xlu1 %v739_v14 }
  0x74   :  { %260 = vperm.xlu1 %706, %v36_v11  }
  0x78   :  { %708 = vset.pattern.permute.xlu1 %v737_v3 }
  0x79   :  { %372 = vperm.xlu1 %708, %v334_v25  }
  0x7d   :  { %v136_v21 = vpop.permute.xlu1 %135  ;;  %v860_v22 = vpop.permute.xlu0 %220  ;;  %357 = vperm.xlu1 %708, %v331_v29  }
  0x7e   :  { %v243_v30 = vmul.f32 %v914_v60, %v860_v22 }
  0x81   :  { %v141_v23 = vpop.permute.xlu1 %140  ;;  %347 = vperm.xlu1 %708, %v329_v32  }
  0x82   :  { %v84_v24 = vpop.permute.xlu0 %83 }
  0x83   :  { %v101_v55 = vmul.f32 %v908_v51, %v84_v24 }
  0x85   :  { %337 = vperm.xlu1 %708, %v327_v36   ;;  %v149_v61 = vadd.f32 %v136_v21, %v101_v55 }
  0x86   :  { %v181_v27 = vpop.permute.xlu1 %180  ;;  %v89_v28 = vpop.permute.xlu0 %88 }
  0x87   :  { %v102_v62 = vmul.f32 %v908_v51, %v89_v28  ;;  %v194_v7 = vmul.f32 %v911_v56, %v181_v27 }
  0x89   :  { %491 = vperm.xlu1 %708, %v487_v41   ;;  %v150_v3 = vadd.f32 %v141_v23, %v102_v62 }
  0x8a   :  { %v874_v31 = vpop.permute.xlu0 %78 }
  0x8b   :  { %v74_v34 = vpop.permute.xlu1 %73  ;;  %v202_v11 = vadd.f32 %v194_v7, %v150_v3  ;;  %v100_v27 = vmul.f32 %v908_v51, %v874_v31 }
  0x8c   :  { %v99_v24 = vmul.f32 %v908_v51, %v74_v34 }
  0x8d   :  { %555 = vperm.xlu1 %708, %v552_v46  }
  0x8e   :  { %v882_v35 = vpop.permute.xlu0 %125 }
  0x8f   :  { %v147_v28 = vadd.f32 %v882_v35, %v99_v24 }
  0x90   :  { %v229_v39 = vpop.permute.xlu1 %228 }
  0x91   :  { %v245_v4 = vmul.f32 %v914_v60, %v229_v39 }
  0x92   :  { %v890_v40 = vpop.permute.xlu0 %120 }
  0x94   :  { %v233_v44 = vpop.permute.xlu1 %232 }
  0x95   :  { %v246_v8 = vmul.f32 %v914_v60, %v233_v44 }
  0x96   :  { %v898_v45 = vpop.permute.xlu0 %58 }
  0x97   :  { %v254_v14 = vadd.f32 %v246_v8, %v202_v11 }
  0x99   :  { %v131_v49 = vpop.permute.xlu1 %130 }
  0x9a   :  { %v906_v50 = vpop.permute.xlu0 %105  ;;  %v148_v37 = vadd.f32 %v131_v49, %v100_v27 }
  0x9e   :  { %v173_v53 = vpop.permute.xlu1 %172 }
  0x9f   :  { %v177_v57 = vpop.permute.xlu0 %176  ;;  %v192_v32 = vmul.f32 %v911_v56, %v173_v53 }
  0xa0   :  { %v193_v58 = vmul.f32 %v911_v56, %v177_v57 }
  0xa1   :  { %v200_v39 = vadd.f32 %v192_v32, %v148_v37  ;;  %v710_v37 = vld [vmem:[%s981_s3 + $0x8] sm:$0xff]  }
  0xa2   :  { %v201_v1 = vadd.f32 %v193_v58, %v149_v61 }
  0xa3   :  { %v281_v63 = vpop.permute.xlu1 %280  ;;  %v169_v0 = vpop.permute.xlu0 %168 }
  0xa4   :  { %v253_v9 = vadd.f32 %v245_v4, %v201_v1  ;;  %v297_v10 = vmul.f32 %v917_v2, %v281_v63  ;;  %v191_v25 = vmul.f32 %v911_v56, %v169_v0 }
  0xa6   :  { %v305_v15 = vadd.f32 %v297_v10, %v253_v9  ;;  %v199_v33 = vadd.f32 %v191_v25, %v147_v28 }
  0xa7   :  { %v153_v5 = vpop.permute.xlu0 %152 }
  0xa8   :  { %v64_v6 = vpop.permute.xlu1 %63  ;;  %v313_v18 = vmax.f32 %v305_v15, 0.0  ;;  %v251_v41 = vadd.f32 %v243_v30, %v199_v33  ;;  %v187_v48 = vmul.f32 %v911_v56, %v153_v5 }
  0xa9   :  { %v97_v1 = vmul.f32 %v908_v51, %v64_v6 }
  0xac   :  { %v69_v12 = vpop.permute.xlu1 %68  ;;  %v285_v13 = vpop.permute.xlu0 %284 }
  0xad   :  { %v298_v16 = vmul.f32 %v917_v2, %v285_v13  ;;  %v98_v58 = vmul.f32 %v908_v51, %v69_v12 }
  0xaf   :  { %v306_v17 = vadd.f32 %v298_v16, %v254_v14  ;;  %v146_v62 = vadd.f32 %v890_v40, %v98_v58 }
  0xb0   :  { %v273_v29 = vpop.permute.xlu0 %272 }
  0xb1   :  { %v314_v19 = vmax.f32 %v306_v17, 0.0  ;;  %v225_v20 = vpop.permute.xlu1 %224  ;;  %v295_v38 = vmul.f32 %v917_v2, %v273_v29 }
  0xb2   :  { %v244_v34 = vmul.f32 %v914_v60, %v225_v20 }
  0xb3   :  { %v326_v21 = vpack.c.bf16 %v314_v19, %v313_v18  ;;  %v303_v43 = vadd.f32 %v295_v38, %v251_v41  ;;  %v96_v19 = vmul.f32 %v908_v51, %v898_v45  ;;  %v740_v38 = vmov 0.0  }
  0xb4   :  { %v252_v31 = vadd.f32 %v244_v34, %v200_v39  ;;  %v269_v0 = vpop.permute.xlu0 %268  ;;  %659 = vmatprep.subr.bf16.mxu1 %v740_v38  ;;  %667 = vmatprep.mubr.msk.bf16.mxu1 %vm741_vm1, %v740_v38 }
  0xb5   :  { %643 = vmatprep.subr.bf16.mxu0 %v326_v21  ;;  %v311_v46 = vmax.f32 %v303_v43, 0.0  ;;  %v294_v9 = vmul.f32 %v917_v2, %v269_v0 }
  0xb6   :  { %v116_v23 = vpop.permute.xlu1 %115  ;;  %644 = vmatpush3.bf16.msra.mxu0 %v326_v21 }
  0xb7   :  { %v145_v5 = vadd.f32 %v116_v23, %v97_v1 }
  0xb8   :  { %v257_v23 = vpop.permute.xlu0 %256 }
  0xb9   :  { %v291_v28 = vmul.f32 %v917_v2, %v257_v23 }
  0xbb   :  { %v161_v26 = vpop.permute.xlu1 %160 }
  0xbc   :  { %v189_v3 = vmul.f32 %v911_v56, %v161_v26 }
  0xbd   :  { %v368_v34 = vpop.permute.xlu0 %367 }
  0xbe   :  { %v197_v10 = vadd.f32 %v189_v3, %v145_v5 }
  0xbf   :  { %v165_v36 = vpop.permute.xlu1 %164 }
  0xc0   :  { %v190_v61 = vmul.f32 %v911_v56, %v165_v36 }
  0xc4   :  { %v277_v42 = vpop.permute.xlu1 %276 }
  0xc5   :  { %v296_v35 = vmul.f32 %v917_v2, %v277_v42 }
  0xc7   :  { %v304_v44 = vadd.f32 %v296_v35, %v252_v31  ;;  %v363_v31 = vpop.permute.xlu0 %362 }
  0xc9   :  { %v312_v47 = vmax.f32 %v304_v44, 0.0  ;;  %v54_v22 = vpop.permute.xlu1 %53 }
  0xca   :  { %v95_v52 = vmul.f32 %v908_v51, %v54_v22 }
  0xcb   :  { %v325_v49 = vpack.c.bf16 %v312_v47, %v311_v46 }
  0xcc   :  { %v143_v53 = vadd.f32 %v906_v50, %v95_v52  ;;  %v198_v50 = vadd.f32 %v190_v61, %v146_v62 }
  0xcd   :  { %645 = vmatprep.subr.bf16.mxu0 %v325_v49 }
  0xce   :  { %v213_v54 = vpop.permute.xlu1 %212  ;;  %646 = vmatpush3.bf16.msra.mxu0 %v325_v49  ;;  %v195_v55 = vadd.f32 %v187_v48, %v143_v53  ;;  %v353_v48 = vpop.permute.xlu0 %352 }
  0xcf   :  { %v241_v7 = vmul.f32 %v914_v60, %v213_v54 }
  0xd1   :  { %v249_v12 = vadd.f32 %v241_v7, %v197_v10 }
  0xd2   :  { %v217_v57 = vpop.permute.xlu1 %216  ;;  %v343_v0 = vpop.permute.xlu0 %342 }
  0xd3   :  { %v242_v63 = vmul.f32 %v914_v60, %v217_v57 }
  0xd5   :  { %v250_v8 = vadd.f32 %v242_v63, %v198_v50 }
  0xd7   :  { %v111_v59 = vpop.permute.xlu1 %110  ;;  %v302_v13 = vadd.f32 %v294_v9, %v250_v8 }
  0xd8   :  { %v144_v24 = vadd.f32 %v111_v59, %v96_v19 }
  0xd9   :  { %v310_v15 = vmax.f32 %v302_v13, 0.0 }
  0xdc   :  { %v157_v4 = vpop.permute.xlu1 %156 }
  0xdd   :  { %v188_v20 = vmul.f32 %v911_v56, %v157_v4 }
  0xdf   :  { %v196_v27 = vadd.f32 %v188_v20, %v144_v24 }
  0xe1   :  { %v265_v11 = vpop.permute.xlu1 %264 }
  0xe2   :  { %v293_v40 = vmul.f32 %v917_v2, %v265_v11 }
  0xe4   :  { %v301_v14 = vadd.f32 %v293_v40, %v249_v12  ;;  %v713_v40 = vld [vmem:[%s983_s5] sm:$0xff]  }
  0xe6   :  { %v309_v16 = vmax.f32 %v301_v14, 0.0  ;;  %v205_v6 = vpop.permute.xlu1 %204 }
  0xe7   :  { %v239_v17 = vmul.f32 %v914_v60, %v205_v6 }
  0xe8   :  { %v324_v18 = vpack.c.bf16 %v310_v15, %v309_v16 }
  0xe9   :  { %v247_v25 = vadd.f32 %v239_v17, %v195_v55  ;;  %v497_v17 = vpop.permute.xlu0 %496 }
  0xea   :  { %v209_v21 = vpop.permute.xlu1 %208  ;;  %647 = vmatprep.subr.bf16.mxu0 %v324_v18 }
  0xeb   :  { %648 = vmatpush3.bf16.msra.mxu0 %v324_v18  ;;  %v240_v26 = vmul.f32 %v914_v60, %v209_v21  ;;  %v299_v30 = vadd.f32 %v291_v28, %v247_v25  ;;  %v711_v60 = vld [vmem:[%s981_s3 + $0x10] sm:$0xff]   ;;  %v550_v25 = vld [vmem:[%s985_s7] sm:$0x1] }
  0xed   :  { %v248_v32 = vadd.f32 %v240_v26, %v196_v27  ;;  %v307_v45 = vmax.f32 %v299_v30, 0.0 }
  0xef   :  { %v261_v29 = vpop.permute.xlu1 %260 }
  0xf0   :  { %v292_v33 = vmul.f32 %v917_v2, %v261_v29  ;;  %v712_v2 = vld [vmem:[%s981_s3 + $0x18] sm:$0xff]  }
  0xf2   :  { %v300_v36 = vadd.f32 %v292_v33, %v248_v32 }
  0xf4   :  { %v308_v51 = vmax.f32 %v300_v36, 0.0  ;;  %v373_v41 = vpop.permute.xlu1 %372 }
  0xf6   :  { %v323_v56 = vpack.c.bf16 %v308_v51, %v307_v45 }
  0xf8   :  { %649 = vmatprep.subr.bf16.mxu0 %v323_v56  ;;  %v358_v44 = vpop.permute.xlu1 %357 }
  0xf9   :  { %650 = vmatpush3.bf16.msra.mxu0 %v323_v56 }
  0xfc   :  { %652 = vmatmul.mubr.msk.bf16.vlgmr.msra.gmra.mxu0 %vm395_vm0, %v710_v37  ;;  %v348_v53 = vpop.permute.xlu1 %347 }
  0xfd   :  { %655 = vmatprep.mubr.msk.bf16.mxu0 %vm395_vm0, %v711_v60 }
 0x100   :  { %v338_v50 = vpop.permute.xlu1 %337 }
 0x104   :  { %656 = vmatmul.mubr.msk.bf16.gmra.mxu0 %vm395_vm0, %v712_v2  ;;  %v492_v15 = vpop.permute.xlu1 %491 }
 0x108   :  { %v556_v26 = vpop.permute.xlu1 %555 }
 0x1bc   :  { %v653_v39 = vpop.f32.mrf.mxu0 }
 0x1bd   :  { %v451_v1 = vadd.f32 %v653_v39, %v348_v53 }
 0x1be   :  { %v442_v42 = vpop.f32.mrf.mxu0 }
 0x1bf   :  { %v475_v8 = vmax.f32 %v451_v1, 0.0  ;;  %v443_v9 = vadd.f32 %v442_v42, %v338_v50 }
 0x1c0   :  { %v654_v43 = vpop.f32.mrf.mxu0 }
 0x1c1   :  { %v454_v61 = vadd.f32 %v654_v43, %v353_v48  ;;  %v473_v12 = vmax.f32 %v443_v9, 0.0 }
 0x1c2   :  { %v445_v35 = vpop.f32.mrf.mxu0 }
 0x1c3   :  { %v476_v4 = vmax.f32 %v454_v61, 0.0  ;;  %v446_v5 = vadd.f32 %v445_v35, %v343_v0 }
 0x1c4   :  { %v657_v46 = vpop.f32.mrf.mxu0 }
 0x1c5   :  { %v467_v22 = vadd.f32 %v657_v46, %v368_v34  ;;  %v484_v10 = vpack.c.bf16 %v476_v4, %v475_v8  ;;  %v474_v11 = vmax.f32 %v446_v5, 0.0 }
 0x1c6   :  { %v458_v47 = vpop.f32.mrf.mxu0 }
 0x1c7   :  { %v479_v55 = vmax.f32 %v467_v22, 0.0  ;;  %v459_v57 = vadd.f32 %v458_v47, %v358_v44  ;;  %v483_v13 = vpack.c.bf16 %v474_v11, %v473_v12 }
 0x1c8   :  { %v658_v52 = vpop.f32.mrf.mxu0 }
 0x1c9   :  { %v470_v49 = vadd.f32 %v658_v52, %v373_v41  ;;  %v477_v3 = vmax.f32 %v459_v57, 0.0 }
 0x1ca   :  { %v461_v54 = vpop.f32.mrf.mxu0 }
 0x1cb   :  { %v480_v58 = vmax.f32 %v470_v49, 0.0  ;;  %v462_v59 = vadd.f32 %v461_v54, %v363_v31 }
 0x1cd   :  { %v478_v62 = vmax.f32 %v462_v59, 0.0  ;;  %v486_v63 = vpack.c.bf16 %v480_v58, %v479_v55 }
 0x1cf   :  { %660 = vmatpush3.bf16.msra.mxu1 %v486_v63  ;;  %v485_v7 = vpack.c.bf16 %v478_v62, %v477_v3 }
 0x1d0   :  { %661 = vmatprep.subr.bf16.mxu1 %v740_v38 }
 0x1d3   :  { %662 = vmatpush3.bf16.msra.mxu1 %v485_v7 }
 0x1d4   :  { %663 = vmatprep.subr.bf16.mxu1 %v740_v38 }
 0x1d7   :  { %664 = vmatpush3.bf16.msra.mxu1 %v484_v10 }
 0x1d8   :  { %665 = vmatprep.subr.bf16.mxu1 %v740_v38 }
 0x1db   :  { %666 = vmatpush3.bf16.msra.mxu1 %v483_v13 }
 0x1dc   :  { %671 = vmatprep.subr.bf16.mxu1 %v740_v38 }
 0x1de   :  { %668 = vmatmul.mubr.msk.bf16.vlgmr.msra.gmra.mxu1 %vm395_vm0, %v713_v40 }
 0x1df   :  { %673 = vmatprep.mubr.msk.bf16.mxu1 %vm741_vm1, %v740_v38 }
 0x29e   :  { %v541_v14 = vpop.f32.mrf.mxu1 }
 0x29f   :  { %v542_v6 = vadd.f32 %v541_v14, %v492_v15 }
 0x2a0   :  { %v669_v16 = vpop.f32.mrf.mxu1 }
 0x2a1   :  { %v548_v21 = vmax.f32 %v542_v6, 0.0 }
 0x2a2   :  { %v544_v18 = vpop.f32.mrf.mxu1 }
 0x2a3   :  { %v545_v19 = vadd.f32 %v544_v18, %v497_v17 }
 0x2a4   :  { %v670_v20 = vpop.f32.mrf.mxu1 }
 0x2a5   :  { %v549_v23 = vmax.f32 %v545_v19, 0.0 }
 0x2a7   :  { %v551_v24 = vpack.c.bf16 %v549_v23, %v548_v21 }
 0x2a9   :  { %672 = vmatpush3.bf16.msra.mxu1 %v551_v24 }
 0x2ac   :  { %674 = vmatmul.mubr.msk.bf16.vlgmr.msra.gmra.mxu1 %vm558_vm2, %v550_v25 }
 0x36c   :  { %v596_v27 = vpop.f32.mrf.mxu1 }
 0x36d   :  { %v597_v28 = vadd.f32 %v596_v27, %v556_v26 }
 0x36e   :  { %v675_v29 = vpop.f32.mrf.mxu1 }
 0x36f   :  { %602 = vst [vmem:[#allocation2] sm:$0x3] %v597_v28 }
 0x370   :  { %v599_v30 = vpop.f32.mrf.mxu1 }
 0x371   :  { %725 = shalt.err (!%p722_p4)
}
 0x372   :  { %612 = dma.vmem_to_hbm [thread:$0]  %s610_s26, 32, %s987_s9, [#allocation3]   ;;  %v676_v32 = vpop.f32.mrf.mxu1 }
 0x373   :  { %734 = dma.done.wait [#allocation3], 32  }
 0x374   :  { %735 = vsyncadd [#allocation3], 4294967264 }
 0x375   :  { %616 = vsyncpa [#allocation3], 1 }

</bundles_post_ra>
